<compile_context>
chip_gen: v7x
topology: tpu7x:2x2x1
jax: 0.10.0
libtpu: 0.0.40
codegen_flags: <defaults>
</compile_context>

<pallas_src>
import math

import jax
import jax.numpy as jnp
from jax.experimental import pallas as pl
from jax.experimental.pallas import tpu as pltpu

D_IN, H1, H2, D_OUT = 2, 16, 32, 2


def mlp_kernel(x_ref, w1_ref, b1_ref, w2_ref, b2_ref, w3_ref, b3_ref, o_ref):
    """One batch tile, feature-major layout: x_ref is (2, T), o_ref is (2, T).

    Batch maps to the 128-lane axis (lane-dense loads/stores); weights stay
    PyTorch-native (out_features, in_features); biases are (out_features, 1)
    so they broadcast across lanes.  All three matmuls go to the MXU with f32
    accumulation; only bias-add / ReLU touch the VALU.
    """
    x = x_ref[...]                                                     # (2, T)

    # Layer 1: Linear(2 -> 16) + ReLU.  K=2 is padded inside the MXU, which is
    # otherwise idle here; this removes ~8-10 VALU ops / 128 lanes vs. the VPU
    # broadcast-mul-add formulation.
    h1 = jnp.dot(w1_ref[...], x, preferred_element_type=jnp.float32) + b1_ref[...]
    h1 = jnp.maximum(h1, 0.0)                                          # (16, T)

    # Layer 2: Linear(16 -> 32) + ReLU.
    h2 = jnp.dot(w2_ref[...], h1, preferred_element_type=jnp.float32) + b2_ref[...]
    h2 = jnp.maximum(h2, 0.0)                                          # (32, T)

    # Layer 3: Linear(32 -> 2).
    y = jnp.dot(w3_ref[...], h2, preferred_element_type=jnp.float32) + b3_ref[...]
    o_ref[...] = y.astype(o_ref.dtype)                                 # (2, T)


def _round_up(v, m):
    return -(-v // m) * m


def _batch_dim_semantics():
    """CORE_PARALLEL on v7x so the batch grid is split across both TensorCores;
    plain "parallel" on single-core generations (no lowering risk, measured
    equivalent to "arbitrary" there)."""
    try:
        kind = jax.devices()[0].device_kind.lower()
    except Exception:  # pragma: no cover - defensive
        kind = ""
    if "v7" in kind:
        return (getattr(pltpu, "CORE_PARALLEL", "parallel"),)
    return ("parallel",)


def _pick_tile(n, tile_n):
    """Batch tile: multiple of 128, load-balanced over the grid steps.

    Peak live VMEM is ~0.5 KB/item (h1 + h2 + dot temporaries + double-buffered
    x / out blocks), so the 16384 default stays ~6-7 MiB: inside v5e's 16 MiB
    scoped default and v7x's 32 MiB scoped / 64 MiB physical per-core budget.
    """
    tile_n = max(128, _round_up(int(tile_n), 128))
    if n <= tile_n:
        return n                      # single block == full array dims (always legal)
    num_tiles = pl.cdiv(n, tile_n)
    return _round_up(pl.cdiv(n, num_tiles), 128)


def generator_forward_fm(x_fm, params, *, tile_n=16384):
    """Fast feature-major boundary: x_fm is (2, N) float32, returns (2, N).

    This is the recommended entry point: no standalone HBM transpose passes,
    the kernel streams lane-dense (2, tile) blocks in and out directly.
    """
    d_in, n = x_fm.shape
    assert d_in == D_IN, f"expected ({D_IN}, N) feature-major input, got {x_fm.shape}"

    w1, b1 = params["w1"], params["b1"]      # (16, 2), (16, 1)
    w2, b2 = params["w2"], params["b2"]      # (32, 16), (32, 1)
    w3, b3 = params["w3"], params["b3"]      # (2, 32),  (2, 1)

    tile = _pick_tile(n, tile_n)
    grid = (pl.cdiv(n, tile),)

    # Weights/biases: constant index_map -> fetched once, VMEM-resident across
    # all grid steps; x / out blocks are double-buffered by the BlockSpec pipeline.
    resident = lambda a: pl.BlockSpec(a.shape, lambda i: (0, 0))

    cost = pl.CostEstimate(
        flops=2 * n * (D_IN * H1 + H1 * H2 + H2 * D_OUT),
        transcendentals=0,
        bytes_accessed=4 * (n * (D_IN + D_OUT)
                            + w1.size + b1.size + w2.size + b2.size
                            + w3.size + b3.size),
    )

    return pl.pallas_call(
        mlp_kernel,
        out_shape=jax.ShapeDtypeStruct((D_OUT, n), jnp.float32),
        grid_spec=pltpu.PrefetchScalarGridSpec(
            num_scalar_prefetch=0,
            grid=grid,
            in_specs=[
                pl.BlockSpec((D_IN, tile), lambda i: (0, i)),   # x tile (lane-dense)
                resident(w1), resident(b1),
                resident(w2), resident(b2),
                resident(w3), resident(b3),
            ],
            out_specs=pl.BlockSpec((D_OUT, tile), lambda i: (0, i)),
        ),
        compiler_params=pltpu.CompilerParams(
            dimension_semantics=_batch_dim_semantics(),
        ),
        cost_estimate=cost,
    )(x_fm, w1, b1, w2, b2, w3, b3)


def generator_forward(x, params, *, tile_n=16384):
    """PyTorch-compatible boundary: x is (N, 2) float32, returns (N, 2).

    Kept for drop-in parity with the nn.Module.  Note: the two transposes here
    are full HBM relayout passes of lane-sparse (N, 2) arrays; prefer
    `generator_forward_fm` with a (2, N) layout when the caller can supply it.
    """
    return generator_forward_fm(x.T, params, tile_n=tile_n).T


def init_params(key):
    """PyTorch nn.Linear default init; weights kept PyTorch-native (out, in),
    biases stored as (out, 1) for lane-broadcast in the feature-major kernel."""
    dims = [(D_IN, H1), (H1, H2), (H2, D_OUT)]
    params = {}
    for i, (fan_in, fan_out) in enumerate(dims, start=1):
        key, kw, kb = jax.random.split(key, 3)
        bound = 1.0 / math.sqrt(fan_in)
        params[f"w{i}"] = jax.random.uniform(
            kw, (fan_out, fan_in), jnp.float32, -bound, bound)
        params[f"b{i}"] = jax.random.uniform(
            kb, (fan_out, 1), jnp.float32, -bound, bound)
    return params


def reference_forward(x, params):
    """Pure-JAX reference in the PyTorch (N, 2) layout."""
    h = jnp.maximum(x @ params["w1"].T + params["b1"].T, 0.0)
    h = jnp.maximum(h @ params["w2"].T + params["b2"].T, 0.0)
    return h @ params["w3"].T + params["b3"].T


if __name__ == "__main__":
    key = jax.random.PRNGKey(0)
    key, kx1, kx2 = jax.random.split(key, 3)
    params = init_params(key)

    # 1) PyTorch-layout compat path: (N, 2) -> (N, 2), single-block case.
    batch = 8
    x_small = jax.random.normal(kx1, (batch, D_IN), jnp.float32)
    out_small = jax.block_until_ready(generator_forward(x_small, params))
    ref_small = reference_forward(x_small, params)
    assert out_small.shape == (batch, D_OUT)
    assert jnp.allclose(out_small, ref_small, atol=1e-5, rtol=1e-5)

    # 2) Feature-major fast path: (2, N) -> (2, N), multi-step batch grid with a
    #    ragged, load-balanced last tile (tile_n=128 forces >1 grid step).
    batch2 = 200
    x_fm = jax.random.normal(kx2, (D_IN, batch2), jnp.float32)
    out_fm = jax.block_until_ready(generator_forward_fm(x_fm, params, tile_n=128))
    ref_fm = reference_forward(x_fm.T, params).T
    assert out_fm.shape == (D_OUT, batch2)
    assert jnp.allclose(out_fm, ref_fm, atol=1e-5, rtol=1e-5)

    print("KERNEL_OK")
</pallas_src>

<mosaic_0001>
module attributes {stable_mosaic.version = 11 : i64} {
  func.func @mlp_kernel(%arg0: i32, %arg1: memref<2x8xf32, #tpu.memory_space<vmem>>, %arg2: memref<16x2xf32, #tpu.memory_space<vmem>>, %arg3: memref<16x1xf32, #tpu.memory_space<vmem>>, %arg4: memref<32x16xf32, #tpu.memory_space<vmem>>, %arg5: memref<32x1xf32, #tpu.memory_space<vmem>>, %arg6: memref<2x32xf32, #tpu.memory_space<vmem>>, %arg7: memref<2x1xf32, #tpu.memory_space<vmem>>, %arg8: memref<2x8xf32, #tpu.memory_space<vmem>>) attributes {dimension_semantics = [#tpu.dimension_semantics<parallel>], iteration_bounds = array<i64: 1>, scalar_prefetch = 0 : i64, scratch_operands = 0 : i64, tpu.core_type = #tpu.core_type<tc>, window_params = [{transform_indices = @transform_0, window_bounds = array<i64: 2, 8>}, {pipeline_mode = #tpu.pipeline_mode<synchronous>, transform_indices = @transform_1, window_bounds = array<i64: 16, 2>}, {pipeline_mode = #tpu.pipeline_mode<synchronous>, transform_indices = @transform_2, window_bounds = array<i64: 16, 1>}, {pipeline_mode = #tpu.pipeline_mode<synchronous>, transform_indices = @transform_3, window_bounds = array<i64: 32, 16>}, {pipeline_mode = #tpu.pipeline_mode<synchronous>, transform_indices = @transform_4, window_bounds = array<i64: 32, 1>}, {pipeline_mode = #tpu.pipeline_mode<synchronous>, transform_indices = @transform_5, window_bounds = array<i64: 2, 32>}, {pipeline_mode = #tpu.pipeline_mode<synchronous>, transform_indices = @transform_6, window_bounds = array<i64: 2, 1>}, {transform_indices = @transform_7, window_bounds = array<i64: 2, 8>}]} {
    %c0 = arith.constant 0 : index
    %c0_0 = arith.constant 0 : index
    %0 = vector.load %arg1[%c0, %c0_0] : memref<2x8xf32, #tpu.memory_space<vmem>>, vector<2x8xf32>
    %c0_1 = arith.constant 0 : index
    %c0_2 = arith.constant 0 : index
    %1 = vector.load %arg2[%c0_1, %c0_2] : memref<16x2xf32, #tpu.memory_space<vmem>>, vector<16x2xf32>
    %cst = arith.constant dense<0.000000e+00> : vector<16x8xf32>
    %2 = tpu.matmul %1, %0, %cst {dimension_numbers = #tpu.dot_dimension_numbers<[1], [0], [0], [1], [0, 0, 1, 1], [], []>} : vector<16x2xf32>, vector<2x8xf32>, vector<16x8xf32> -> vector<16x8xf32>
    %c0_3 = arith.constant 0 : index
    %c0_4 = arith.constant 0 : index
    %3 = vector.load %arg3[%c0_3, %c0_4] : memref<16x1xf32, #tpu.memory_space<vmem>>, vector<16x1xf32>
    %4 = vector.broadcast %3 : vector<16x1xf32> to vector<16x8xf32>
    %5 = arith.addf %2, %4 : vector<16x8xf32>
    %cst_5 = arith.constant 0.000000e+00 : f32
    %6 = vector.broadcast %cst_5 : f32 to vector<16x8xf32>
    %7 = arith.maximumf %5, %6 : vector<16x8xf32>
    %c0_6 = arith.constant 0 : index
    %c0_7 = arith.constant 0 : index
    %8 = vector.load %arg4[%c0_6, %c0_7] : memref<32x16xf32, #tpu.memory_space<vmem>>, vector<32x16xf32>
    %cst_8 = arith.constant dense<0.000000e+00> : vector<32x8xf32>
    %9 = tpu.matmul %8, %7, %cst_8 {dimension_numbers = #tpu.dot_dimension_numbers<[1], [0], [0], [1], [0, 0, 1, 1], [], []>} : vector<32x16xf32>, vector<16x8xf32>, vector<32x8xf32> -> vector<32x8xf32>
    %c0_9 = arith.constant 0 : index
    %c0_10 = arith.constant 0 : index
    %10 = vector.load %arg5[%c0_9, %c0_10] : memref<32x1xf32, #tpu.memory_space<vmem>>, vector<32x1xf32>
    %11 = vector.broadcast %10 : vector<32x1xf32> to vector<32x8xf32>
    %12 = arith.addf %9, %11 : vector<32x8xf32>
    %cst_11 = arith.constant 0.000000e+00 : f32
    %13 = vector.broadcast %cst_11 : f32 to vector<32x8xf32>
    %14 = arith.maximumf %12, %13 : vector<32x8xf32>
    %c0_12 = arith.constant 0 : index
    %c0_13 = arith.constant 0 : index
    %15 = vector.load %arg6[%c0_12, %c0_13] : memref<2x32xf32, #tpu.memory_space<vmem>>, vector<2x32xf32>
    %cst_14 = arith.constant dense<0.000000e+00> : vector<2x8xf32>
    %16 = tpu.matmul %15, %14, %cst_14 {dimension_numbers = #tpu.dot_dimension_numbers<[1], [0], [0], [1], [0, 0, 1, 1], [], []>} : vector<2x32xf32>, vector<32x8xf32>, vector<2x8xf32> -> vector<2x8xf32>
    %c0_15 = arith.constant 0 : index
    %c0_16 = arith.constant 0 : index
    %17 = vector.load %arg7[%c0_15, %c0_16] : memref<2x1xf32, #tpu.memory_space<vmem>>, vector<2x1xf32>
    %18 = vector.broadcast %17 : vector<2x1xf32> to vector<2x8xf32>
    %19 = arith.addf %16, %18 : vector<2x8xf32>
    %c0_17 = arith.constant 0 : index
    %c0_18 = arith.constant 0 : index
    %20 = vector.load %arg8[%c0_17, %c0_18] : memref<2x8xf32, #tpu.memory_space<vmem>>, vector<2x8xf32>
    tpu.vector_store %arg8[%c0_17, %c0_18], %19 {strides = array<i32>} : memref<2x8xf32, #tpu.memory_space<vmem>>, vector<2x8xf32>,
    return
  }
  func.func @transform_0(%arg0: i32) -> (i32, i32) {
    %c0_i32 = arith.constant 0 : i32
    %c0_i32_0 = arith.constant 0 : i32
    return %c0_i32, %arg0 : i32, i32
  }
  func.func @transform_1(%arg0: i32) -> (i32, i32) {
    %c0_i32 = arith.constant 0 : i32
    %c0_i32_0 = arith.constant 0 : i32
    %c0_i32_1 = arith.constant 0 : i32
    return %c0_i32, %c0_i32_0 : i32, i32
  }
  func.func @transform_2(%arg0: i32) -> (i32, i32) {
    %c0_i32 = arith.constant 0 : i32
    %c0_i32_0 = arith.constant 0 : i32
    %c0_i32_1 = arith.constant 0 : i32
    return %c0_i32, %c0_i32_0 : i32, i32
  }
  func.func @transform_3(%arg0: i32) -> (i32, i32) {
    %c0_i32 = arith.constant 0 : i32
    %c0_i32_0 = arith.constant 0 : i32
    %c0_i32_1 = arith.constant 0 : i32
    return %c0_i32, %c0_i32_0 : i32, i32
  }
  func.func @transform_4(%arg0: i32) -> (i32, i32) {
    %c0_i32 = arith.constant 0 : i32
    %c0_i32_0 = arith.constant 0 : i32
    %c0_i32_1 = arith.constant 0 : i32
    return %c0_i32, %c0_i32_0 : i32, i32
  }
  func.func @transform_5(%arg0: i32) -> (i32, i32) {
    %c0_i32 = arith.constant 0 : i32
    %c0_i32_0 = arith.constant 0 : i32
    %c0_i32_1 = arith.constant 0 : i32
    return %c0_i32, %c0_i32_0 : i32, i32
  }
  func.func @transform_6(%arg0: i32) -> (i32, i32) {
    %c0_i32 = arith.constant 0 : i32
    %c0_i32_0 = arith.constant 0 : i32
    %c0_i32_1 = arith.constant 0 : i32
    return %c0_i32, %c0_i32_0 : i32, i32
  }
  func.func @transform_7(%arg0: i32) -> (i32, i32) {
    %c0_i32 = arith.constant 0 : i32
    %c0_i32_0 = arith.constant 0 : i32
    return %c0_i32, %arg0 : i32, i32
  }
}

</mosaic_0001>

<bundles_post_ra>
// kernel: tpu_custom_call.1
= control target key start
LH: loop header
LB: loop body
LE: loop exit
PB: predicated region body
PF: predicated region fallthrough
CT: control target
= control target key end

     0   :  { %vm49_vm0 = vcmask 1041408   ;;  %vm42_vm1 = vcmask 15360   ;;  %v446_v4 = vmov 0   ;;  %s552_s0 = inlined_call_operand.vmem [shape: f32[2,8], index: 0, kind: input, shape index: {}]   ;;  %s553_s1 = inlined_call_operand.vmem [shape: f32[16,2], index: 1, kind: input, shape index: {}]   ;;  %s554_s2 = inlined_call_operand.vmem [shape: f32[16,1], index: 2, kind: input, shape index: {}]   ;;  %s555_s3 = inlined_call_operand.vmem [shape: f32[32,16], index: 3, kind: input, shape index: {}]   ;;  %s556_s4 = inlined_call_operand.vmem [shape: f32[32,1], index: 4, kind: input, shape index: {}]   ;;  %s557_s5 = inlined_call_operand.vmem [shape: f32[2,32], index: 5, kind: input, shape index: {}]   ;;  %s558_s6 = inlined_call_operand.vmem [shape: f32[2,1], index: 6, kind: input, shape index: {}]   ;;  %s559_s7 = inlined_call_operand.hbm [shape: f32[2,8], index: 7, kind: output, shape index: {}]  }
   0x1   :  { %v27_v0 = vld [vmem:[%s552_s0] sm:$0x3]  ;;  %v29_v2 = vld [vmem:[%s553_s1 + $0x8] sm:$0xff]  ;;  %420 = vset.pattern.permute.xlu0 %v446_v4 }
   0x2   :  { %v28_v1 = vld [vmem:[%s553_s1] sm:$0xff]  ;;  %379 = vmatprep.subr.msk.mxu0 %vm49_vm0, %v27_v0 }
   0x3   :  { %381 = vmatprep.mubr.msk.f32.mxu0 %vm42_vm1, %v28_v1  ;;  %v30_v3 = vld [vmem:[%s554_s2] sm:$0xff]  ;;  %380 = vmatpush3.msk.msra.mxu0 %vm49_vm0, %v27_v0 }
   0x4   :  { %12 = vsyncpa [#allocation3], 0  ;;  %382 = vmatmul.mubr.msk.f32.vlgmr.msra.gmra.mrb[0].mxu0 %vm42_vm1, %v29_v2  ;;  %34 = vperm.xlu0 %420, %v30_v3   ;;  %v31_v5 = vld [vmem:[%s554_s2 + $0x8] sm:$0xff]  ;;  %v136_v6 = vld [vmem:[%s556_s4 + $0x10] sm:$0xff]  ;;  %vm158_vm2 = vcmask 130048   ;;  %v447_v24 = vmov 0.0|0.0  }
   0x5   :  { %421 = vset.pattern.permute.xlu1 %v446_v4  ;;  %v261_v7 = vld [vmem:[%s558_s6] sm:$0x3]  ;;  %v135_v10 = vld [vmem:[%s556_s4 + $0x8] sm:$0xff]  ;;  %v137_v11 = vld [vmem:[%s556_s4 + $0x18] sm:$0xff]  ;;  %409 = vmatprep.subr.bf16.mxu0 %v447_v24  ;;  %vm448_vm3 = vmmov 0   ;;  %v449_v25 = vmov 0.0  }
   0x6   :  { %v130_v8 = vld [vmem:[%s555_s3] sm:$0xff]  ;;  %v131_v21 = vld [vmem:[%s555_s3 + $0x8] sm:$0xff]  ;;  %v132_v22 = vld [vmem:[%s555_s3 + $0x10] sm:$0xff]  ;;  %402 = vmatprep.mubr.msk.f32.mxu0 %vm448_vm3, %v449_v25  ;;  %vm267_vm4 = vcmask 261120   ;;  %s450_s25 = smov [#allocation2]   ;;  %vm341_vm5 = vcmask 58368  }
   0x7   :  { %388 = vmatprep.mubr.msk.f32.mxu1 %vm158_vm2, %v130_v8  ;;  %v134_v9 = vld [vmem:[%s556_s4] sm:$0xff]  ;;  %v133_v23 = vld [vmem:[%s555_s3 + $0x18] sm:$0xff]  ;;  %s349_s26 = sshll.u32 %s450_s25, 4  ;;  %s350_s26 = int_to_ptr.vmem [resolvable:$true] %s349_s26 }
   0x8   :  { %39 = vperm.xlu0 %420, %v31_v5   ;;  %140 = vperm.xlu1 %421, %v134_v9   ;;  %v260_v44 = vld [vmem:[%s557_s5] sm:$0x3]  ;;  %s422_s27 = scalar_lea.vmem %s350_s26, 32  ;;  %p427_p1 = scmp.lt.s32.totalorder %s350_s26, %s350_s26 }
   0x9   :  { %p423_p0 = scmp.ne.s32.totalorder %s350_s26, %s422_s27  ;;  %p428_p2 = scmp.lt.s32.totalorder %s422_s27, %s422_s27 }
   0xb   :  { %p429_p3 = por %p428_p2, %p427_p1 }
   0xc   :  { %150 = vperm.xlu0 %420, %v136_v6   ;;  %145 = vperm.xlu1 %421, %v135_v10  }
   0xd   :  { %p430_p4 = pnand %p429_p3, %p423_p0 }
  0x10   :  { %264 = vperm.xlu0 %420, %v261_v7   ;;  %155 = vperm.xlu1 %421, %v137_v11  }
  0x83   :  { %v35_v12 = vpop.permute.xlu0 %34 }
  0x87   :  { %v40_v13 = vpop.permute.xlu0 %39  ;;  %v141_v26 = vpop.permute.xlu1 %140 }
  0x8b   :  { %v146_v27 = vpop.permute.xlu1 %145  ;;  %v151_v36 = vpop.permute.xlu0 %150 }
  0x8f   :  { %v156_v33 = vpop.permute.xlu1 %155  ;;  %v265_v45 = vpop.permute.xlu0 %264 }
  0xd7   :  { %v383_v14 = vpop.f32.mrb[0].mxu0 }
  0xd8   :  { %v125_v15 = vadd.f32 %v383_v14, %v40_v13  ;;  %v119_v16 = vpop.f32.mrb[1].mxu0 }
  0xd9   :  { %v120_v17 = vadd.f32 %v119_v16, %v35_v12 }
  0xda   :  { %v129_v18 = vmax.f32 %v125_v15, 0.0 }
  0xdb   :  { %v128_v19 = vmax.f32 %v120_v17, 0.0 }
  0xdd   :  { %v405_v20 = vpack.c.bf16 %v129_v18, %v128_v19 }
  0xdf   :  { %406 = vmatprep.subr.bf16.mxu1 %v405_v20 }
  0xe0   :  { %408 = vmatpush3.bf16.msra.mxu1 %v405_v20 }
  0xe3   :  { %389 = vmatmul.mubr.msk.f32.vlgmr.msra.gmra.mrb[0].mxu1 %vm158_vm2, %v131_v21 }
  0xe4   :  { %391 = vmatprep.mubr.msk.f32.mxu1 %vm158_vm2, %v132_v22 }
  0xe7   :  { %392 = vmatmul.mubr.msk.f32.gmra.mrb[2].mxu1 %vm158_vm2, %v133_v23 }
 0x1b6   :  { %v390_v28 = vpop.f32.mrb[0].mxu1 }
 0x1b7   :  { %v243_v29 = vadd.f32 %v390_v28, %v146_v27  ;;  %v237_v30 = vpop.f32.mrb[1].mxu1 }
 0x1b8   :  { %v238_v31 = vadd.f32 %v237_v30, %v141_v26 }
 0x1b9   :  { %v257_v32 = vmax.f32 %v243_v29, 0.0 }
 0x1ba   :  { %v256_v34 = vmax.f32 %v238_v31, 0.0  ;;  %v393_v35 = vpop.f32.mrb[2].mxu1 }
 0x1bb   :  { %v253_v37 = vadd.f32 %v393_v35, %v156_v33  ;;  %v247_v38 = vpop.f32.mrb[3].mxu1 }
 0x1bc   :  { %v410_v39 = vpack.c.bf16 %v257_v32, %v256_v34  ;;  %v248_v40 = vadd.f32 %v247_v38, %v151_v36 }
 0x1bd   :  { %v259_v41 = vmax.f32 %v253_v37, 0.0 }
 0x1be   :  { %v258_v42 = vmax.f32 %v248_v40, 0.0  ;;  %411 = vmatpush3.bf16.msra.mxu0 %v410_v39 }
 0x1bf   :  { %412 = vmatprep.subr.bf16.mxu0 %v447_v24 }
 0x1c0   :  { %v413_v43 = vpack.c.bf16 %v259_v41, %v258_v42 }
 0x1c2   :  { %414 = vmatpush3.bf16.msra.mxu0 %v413_v43 }
 0x1c5   :  { %403 = vmatmul.mubr.msk.f32.vlgmr.msra.gmra.mrb[2].mxu0 %vm267_vm4, %v260_v44 }
 0x298   :  { %v337_v46 = vpop.f32.mrb[2].mxu0 }
 0x299   :  { %v338_v47 = vadd.f32 %v337_v46, %v265_v45  ;;  %v404_v48 = vpop.f32.mrb[3].mxu0 }
 0x29b   :  { %342 = vst.msk [vmem:[#allocation2] sm:$0x3] %vm341_vm5, %v338_v47 }
 0x29c   :  { %433 = shalt.err (!%p430_p4)
}
 0x29d   :  { %s434_s29 = scalar_lea.hbm %s559_s7, 32 }
 0x29e   :  { %p435_p5 = scmp.ne.s32.totalorder %s559_s7, %s434_s29  ;;  %p438_p6 = scmp.lt.u32.totalorder %s434_s29, %s559_s7 }
 0x2a0   :  { %p440_p7 = pnand %p438_p6, %p435_p5 }
 0x2a2   :  { %443 = shalt.err (!%p440_p7)
}
 0x2a3   :  { %352 = dma.vmem_to_hbm [thread:$0]  %s350_s26, 32, %s559_s7, [#allocation3]  }
 0x2a4   :  { %444 = dma.done.wait [#allocation3], 32  }
 0x2a5   :  { %445 = vsyncadd [#allocation3], 4294967264 }
 0x2a6   :  { %356 = vsyncpa [#allocation3], 1 }

</bundles_post_ra>
